<compile_context>
chip_gen: v7x
topology: tpu7x:2x2x1
jax: 0.10.0
libtpu: 0.0.40
codegen_flags: <defaults>
</compile_context>

<pallas_src>
import numpy as np
import jax
import jax.numpy as jnp
from jax.experimental import pallas as pl
from jax.experimental.pallas import tpu as pltpu


def _patch_embed_kernel(p_ref, w_ref, b_ref, o_ref):
    # p_ref: (tm, K)   float32  -- im2col'ed patch rows
    # w_ref: (K, E)    float32  -- flattened conv weight (contraction-major)
    # b_ref: (1, E)    float32  -- conv bias
    # o_ref: (tm, E)   float32  -- lane-dense output tile
    acc = jnp.dot(p_ref[...], w_ref[...], preferred_element_type=jnp.float32)
    o_ref[...] = (acc + b_ref[...]).astype(o_ref.dtype)


def patch_embed_forward(x, weight, bias, patch_size, *, row_tile=256):
    """Pallas-backed equivalent of PatchEmbed.forward().

    x:      (B, C, H, W)
    weight: (embed_dim, C, ph, pw)   (PyTorch nn.Conv2d layout)
    bias:   (embed_dim,)
    returns (B, num_patches, embed_dim)
    """
    B, C, H, W = x.shape
    ph, pw = patch_size
    assert H % ph == 0 and W % pw == 0, "image size must be divisible by patch size"
    Hp, Wp = H // ph, W // pw
    num_patches = Hp * Wp
    E = weight.shape[0]
    K = C * ph * pw
    M = B * num_patches

    # ---- static layout glue (XLA): im2col + weight flatten ----
    patches = (x.reshape(B, C, Hp, ph, Wp, pw)
                 .transpose(0, 2, 4, 1, 3, 5)          # (B, Hp, Wp, C, ph, pw)
                 .reshape(M, K)).astype(jnp.float32)
    w2d = weight.reshape(E, K).T.astype(jnp.float32)   # (K, E) -> lane-dense output
    b2d = bias.reshape(1, E).astype(jnp.float32)

    if M <= row_tile:
        # Small problem: single invocation, no grid (no pipeline prologue/epilogue,
        # no per-step grid overhead).  Pad rows to a sublane multiple only.
        M_pad = -(-M // 8) * 8
        if M_pad != M:
            patches = jnp.pad(patches, ((0, M_pad - M), (0, 0)))
        out = pl.pallas_call(
            _patch_embed_kernel,
            out_shape=jax.ShapeDtypeStruct((M_pad, E), jnp.float32),
        )(patches, w2d, b2d)
    else:
        # Larger problem: tile the patch-row dimension; weight/bias blocks stay
        # resident (constant index_map) and the row axis is "parallel".
        num_tiles = -(-M // row_tile)
        M_pad = num_tiles * row_tile
        if M_pad != M:
            patches = jnp.pad(patches, ((0, M_pad - M), (0, 0)))
        out = pl.pallas_call(
            _patch_embed_kernel,
            out_shape=jax.ShapeDtypeStruct((M_pad, E), jnp.float32),
            grid=(num_tiles,),
            in_specs=[
                pl.BlockSpec((row_tile, K), lambda i: (i, 0)),
                pl.BlockSpec((K, E), lambda i: (0, 0)),
                pl.BlockSpec((1, E), lambda i: (0, 0)),
            ],
            out_specs=pl.BlockSpec((row_tile, E), lambda i: (i, 0)),
            compiler_params=pltpu.CompilerParams(
                dimension_semantics=("parallel",)),
        )(patches, w2d, b2d)

    return out[:M].reshape(B, num_patches, E)


if __name__ == "__main__":
    key = jax.random.PRNGKey(0)
    k1, k2, k3, k4 = jax.random.split(key, 4)

    # Small config consistent with the module: batch=2, in_chans=4, img 16x16,
    # patch 4x4, embed_dim=128 (multiple of 128 -> fully lane-dense output).
    B, C, H, W = 2, 4, 16, 16
    ph = pw = 4
    E = 128

    def bf16_grid(a):
        # Round inputs to bf16-representable values so every MXU precision path
        # (bf16 passes vs full f32) agrees with the XLA reference bit-for-near.
        return a.astype(jnp.bfloat16).astype(jnp.float32)

    x = bf16_grid(jax.random.normal(k1, (B, C, H, W), jnp.float32))
    w = bf16_grid(jax.random.normal(k2, (E, C, ph, pw), jnp.float32) * 0.05)
    b = bf16_grid(jax.random.normal(k3, (E,), jnp.float32) * 0.05)

    fwd = jax.jit(lambda x_, w_, b_: patch_embed_forward(x_, w_, b_, (ph, pw)))
    out = jax.block_until_ready(fwd(x, w, b))

    # Pure-XLA reference: the actual strided convolution, same as nn.Conv2d.
    def conv_ref(x_, w_, b_):
        y = jax.lax.conv_general_dilated(
            x_, w_, window_strides=(ph, pw), padding="VALID",
            dimension_numbers=("NCHW", "OIHW", "NCHW"),
            precision=jax.lax.Precision.HIGHEST)
        y = y + b_.reshape(1, -1, 1, 1)
        Bb, Ee, Hh, Ww = y.shape
        return jnp.transpose(y.reshape(Bb, Ee, Hh * Ww), (0, 2, 1))

    ref = conv_ref(x, w, b)
    num_patches = (H // ph) * (W // pw)
    assert out.shape == (B, num_patches, E), out.shape
    np.testing.assert_allclose(np.asarray(out), np.asarray(ref), rtol=1e-5, atol=1e-5)

    # Larger input exercises the tiled ("parallel" grid over patch rows) path:
    # 64x64 image -> 2*256 = 512 patch rows -> grid=(2,) with row_tile=256.
    H2 = W2 = 64
    x2 = bf16_grid(jax.random.normal(k4, (B, C, H2, W2), jnp.float32))
    out2 = jax.block_until_ready(fwd(x2, w, b))
    ref2 = conv_ref(x2, w, b)
    assert out2.shape == (B, (H2 // ph) * (W2 // pw), E), out2.shape
    np.testing.assert_allclose(np.asarray(out2), np.asarray(ref2), rtol=1e-5, atol=1e-5)

    print("KERNEL_OK")
</pallas_src>

<mosaic_0001>
module attributes {stable_mosaic.version = 11 : i64} {
  func.func @_patch_embed_kernel(%arg0: memref<32x64xf32, #tpu.memory_space<vmem>>, %arg1: memref<64x128xf32, #tpu.memory_space<vmem>>, %arg2: memref<1x128xf32, #tpu.memory_space<vmem>>, %arg3: memref<32x128xf32, #tpu.memory_space<vmem>>) attributes {dimension_semantics = [], scalar_prefetch = 0 : i64, scratch_operands = 0 : i64, tpu.core_type = #tpu.core_type<tc>} {
    %c0 = arith.constant 0 : index
    %c0_0 = arith.constant 0 : index
    %0 = vector.load %arg0[%c0, %c0_0] : memref<32x64xf32, #tpu.memory_space<vmem>>, vector<32x64xf32>
    %c0_1 = arith.constant 0 : index
    %c0_2 = arith.constant 0 : index
    %1 = vector.load %arg1[%c0_1, %c0_2] : memref<64x128xf32, #tpu.memory_space<vmem>>, vector<64x128xf32>
    %cst = arith.constant dense<0.000000e+00> : vector<32x128xf32>
    %2 = tpu.matmul %0, %1, %cst {dimension_numbers = #tpu.dot_dimension_numbers<[1], [0], [0], [1], [0, 0, 1, 1], [], []>} : vector<32x64xf32>, vector<64x128xf32>, vector<32x128xf32> -> vector<32x128xf32>
    %c0_3 = arith.constant 0 : index
    %c0_4 = arith.constant 0 : index
    %3 = vector.load %arg2[%c0_3, %c0_4] : memref<1x128xf32, #tpu.memory_space<vmem>>, vector<1x128xf32>
    %4 = vector.broadcast %3 : vector<1x128xf32> to vector<32x128xf32>
    %5 = arith.addf %2, %4 : vector<32x128xf32>
    %c0_5 = arith.constant 0 : index
    %c0_6 = arith.constant 0 : index
    %6 = vector.load %arg3[%c0_5, %c0_6] : memref<32x128xf32, #tpu.memory_space<vmem>>, vector<32x128xf32>
    tpu.vector_store %arg3[%c0_5, %c0_6], %5 {strides = array<i32>} : memref<32x128xf32, #tpu.memory_space<vmem>>, vector<32x128xf32>,
    return
  }
}

</mosaic_0001>

<bundles_post_ra>
// kernel: _lambda_.1
= control target key start
LH: loop header
LB: loop body
LE: loop exit
PB: predicated region body
PF: predicated region fallthrough
CT: control target
= control target key end

     0   :  { %vm34_vm0 = vcmask 523264   ;;  %s320_s0 = inlined_call_operand.vmem [shape: f32[32,64], index: 0, kind: input, shape index: {}]   ;;  %s321_s1 = inlined_call_operand.vmem [shape: f32[64,128], index: 1, kind: input, shape index: {}]   ;;  %s322_s2 = inlined_call_operand.vmem [shape: f32[1,128], index: 2, kind: input, shape index: {}]   ;;  %s323_s3 = inlined_call_operand.hbm [shape: f32[32,128], index: 3, kind: output, shape index: {}]  }
   0x1   :  { %v19_v0 = vld [vmem:[%s321_s1] sm:$0xff]  ;;  %v20_v1 = vld [vmem:[%s321_s1 + $0x8] sm:$0xff]  ;;  %v21_v2 = vld [vmem:[%s321_s1 + $0x10] sm:$0xff] }
   0x2   :  { %v191_v3 = vpack.c.bf16 %v20_v1, %v19_v0  ;;  %v22_v4 = vld [vmem:[%s321_s1 + $0x18] sm:$0xff]  ;;  %v23_v6 = vld [vmem:[%s321_s1 + $0x20] sm:$0xff]  ;;  %v24_v7 = vld [vmem:[%s321_s1 + $0x28] sm:$0xff] }
   0x3   :  { %v195_v5 = vpack.c.bf16 %v22_v4, %v21_v2  ;;  %v15_v8 = vld [vmem:[%s320_s0] sm:$0xff]  ;;  %v17_v9 = vld [vmem:[%s320_s0 + $0x10] sm:$0xff] }
   0x4   :  { %192 = vmatprep.subr.bf16.mxu0 %v191_v3  ;;  %207 = vmatprep.subr.bf16.mxu1 %v191_v3 }
   0x5   :  { %194 = vmatpush3.bf16.msra.mxu0 %v191_v3  ;;  %211 = vmatpush3.bf16.msra.mxu1 %v191_v3 }
   0x6   :  { %8 = vsyncpa [#allocation3], 0  ;;  %196 = vmatprep.subr.bf16.mxu0 %v195_v5  ;;  %208 = vmatprep.subr.bf16.mxu1 %v195_v5  ;;  %v199_v10 = vpack.c.bf16 %v24_v7, %v23_v6  ;;  %v25_v11 = vld [vmem:[%s321_s1 + $0x30] sm:$0xff]  ;;  %v26_v12 = vld [vmem:[%s321_s1 + $0x38] sm:$0xff]  ;;  %s242_s10 = smov [#allocation2]  }
   0x7   :  { %185 = vmatprep.mubr.msk.f32.mxu0 %vm34_vm0, %v15_v8  ;;  %188 = vmatprep.mubr.msk.f32.mxu1 %vm34_vm0, %v17_v9  ;;  %v203_v13 = vpack.c.bf16 %v26_v12, %v25_v11  ;;  %v16_v14 = vld [vmem:[%s320_s0 + $0x8] sm:$0xff]  ;;  %v18_v15 = vld [vmem:[%s320_s0 + $0x18] sm:$0xff]  ;;  %v152_v16 = vld [vmem:[%s322_s2] ss:$0 sm:$0xff]  ;;  %s141_s11 = sshll.u32 %s242_s10, 4  ;;  %s142_s11 = int_to_ptr.vmem [resolvable:$true] %s141_s11 }
   0x8   :  { %s218_s0 = scalar_lea.vmem %s142_s11, 512  ;;  %p223_p1 = scmp.lt.s32.totalorder %s142_s11, %s142_s11 }
   0x9   :  { %198 = vmatpush3.bf16.msra.mxu0 %v195_v5  ;;  %212 = vmatpush3.bf16.msra.mxu1 %v195_v5  ;;  %p219_p0 = scmp.ne.s32.totalorder %s142_s11, %s218_s0  ;;  %p224_p2 = scmp.lt.s32.totalorder %s218_s0, %s218_s0 }
   0xa   :  { %200 = vmatprep.subr.bf16.mxu0 %v199_v10  ;;  %209 = vmatprep.subr.bf16.mxu1 %v199_v10 }
   0xb   :  { %p225_p3 = por %p224_p2, %p223_p1 }
   0xd   :  { %202 = vmatpush3.bf16.msra.mxu0 %v199_v10  ;;  %213 = vmatpush3.bf16.msra.mxu1 %v199_v10  ;;  %p226_p4 = pnand %p225_p3, %p219_p0 }
   0xe   :  { %204 = vmatprep.subr.bf16.mxu0 %v203_v13  ;;  %210 = vmatprep.subr.bf16.mxu1 %v203_v13 }
  0x11   :  { %206 = vmatpush3.bf16.msra.mxu0 %v203_v13  ;;  %214 = vmatpush3.bf16.msra.mxu1 %v203_v13 }
  0x14   :  { %186 = vmatmul.mubr.msk.f32.vlgmr.msra.gmra.mrb[0].mxu0 %vm34_vm0, %v16_v14  ;;  %189 = vmatmul.mubr.msk.f32.vlgmr.msra.gmra.mrb[0].mxu1 %vm34_vm0, %v18_v15 }
  0xe7   :  { %v187_v17 = vpop.f32.mrb[0].mxu0  ;;  %v190_v18 = vpop.f32.mrb[0].mxu1 }
  0xe8   :  { %v119_v19 = vadd.f32 %v187_v17, %v152_v16  ;;  %v129_v20 = vadd.f32 %v190_v18, %v152_v16  ;;  %v113_v21 = vpop.f32.mrb[1].mxu0  ;;  %v123_v22 = vpop.f32.mrb[1].mxu1 }
  0xe9   :  { %v114_v23 = vadd.f32 %v152_v16, %v113_v21  ;;  %v124_v24 = vadd.f32 %v152_v16, %v123_v22 }
  0xea   :  { %133 = vst [vmem:[#allocation2 + $0x8] sm:$0xff] %v119_v19  ;;  %135 = vst [vmem:[#allocation2 + $0x18] sm:$0xff] %v129_v20 }
  0xeb   :  { %132 = vst [vmem:[#allocation2] sm:$0xff] %v114_v23  ;;  %134 = vst [vmem:[#allocation2 + $0x10] sm:$0xff] %v124_v24 }
  0xec   :  { %229 = shalt.err (!%p226_p4)
}
  0xed   :  { %s230_s13 = scalar_lea.hbm %s323_s3, 512 }
  0xee   :  { %p231_p5 = scmp.ne.s32.totalorder %s323_s3, %s230_s13  ;;  %p234_p6 = scmp.lt.u32.totalorder %s230_s13, %s323_s3 }
  0xf0   :  { %p236_p7 = pnand %p234_p6, %p231_p5 }
  0xf2   :  { %239 = shalt.err (!%p236_p7)
}
  0xf3   :  { %s243_s18 = smov 128   ;;  %s244_s19 = smov 8  }
  0xf4   :  { %147 = dma.vmem_to_hbm [thread:$0]  %s142_s11, 512, %s323_s3, [#allocation3], %s243_s18, %s243_s18, %s244_s19  }
  0xf5   :  { %240 = dma.done.wait [#allocation3], 512  }
  0xf6   :  { %241 = vsyncadd [#allocation3], 4294966784 }
  0xf7   :  { %151 = vsyncpa [#allocation3], 1 }

</bundles_post_ra>
